<compile_context>
chip_gen: v6e
topology: v6e:2x2x1
jax: 0.10.0
libtpu: 0.0.40
codegen_flags: <defaults>
</compile_context>

<pallas_src>
import jax
import jax.numpy as jnp
from jax.experimental import pallas as pl
from jax.experimental.pallas import tpu as pltpu

_MIN_PALLAS_BYTES = 64 * 1024           # below this a fused XLA op beats a kernel dispatch
_TARGET_TILE_BYTES = 6 * 1024 * 1024    # per-buffer tile; in+out double-buffered ~ 24 MiB
_VMEM_LIMIT_BYTES = 48 * 1024 * 1024    # fits v7x (64 MiB / TC); v5e/v6e have 128 MiB
_LANE_CHOICES = (4096, 2048, 1024, 512, 256, 128)


def _mish_kernel(x_ref, o_ref):
    """Elementwise mish on one (row_tile, cols) VMEM block."""
    xf = x_ref[...].astype(jnp.float32)        # compute in f32 (inputs may be bf16)
    # tanh(softplus(x)) == (t^2 + 2t) / (t^2 + 2t + 2) with t = exp(x):
    # a single EUP transcendental per element.  The exp argument is clamped at
    # 20 (PyTorch softplus threshold); for x > 20 the activation is exactly x.
    t = jnp.exp(jnp.minimum(xf, 20.0))
    num = t * (t + 2.0)
    y = jnp.where(xf > 20.0, xf, xf * (num / (num + 2.0)))
    o_ref[...] = y.astype(o_ref.dtype)


def _mish_ref(x: jax.Array) -> jax.Array:
    """Pure-JAX reference == PyTorch x * tanh(softplus(x)) (threshold = 20).
    Also used as the small-input fast path and for ragged tails."""
    xf = x.astype(jnp.float32)
    sp = jnp.where(xf > 20.0, xf, jnp.log1p(jnp.exp(jnp.minimum(xf, 20.0))))
    return (xf * jnp.tanh(sp)).astype(x.dtype)


def _num_tensorcores() -> int:
    """Best-effort TensorCores-per-device (v7x: 2; v5e/v6e: 1). Safe fallback: 1."""
    try:
        kind = jax.devices()[0].device_kind.lower()
    except Exception:
        return 1
    return 2 if ("v7" in kind or "7x" in kind) else 1


def _mish_pallas_2d(x2d: jax.Array) -> jax.Array:
    """Run the Pallas kernel over a (rows, cols) slab; cols is a multiple of 128."""
    rows, cols = x2d.shape
    itemsize = jnp.dtype(x2d.dtype).itemsize
    sub = 8 * max(1, 4 // itemsize)            # sublane packing: 8 f32 / 16 bf16 / 32 i8

    # Largest sublane-aligned row tile whose buffer stays <= _TARGET_TILE_BYTES.
    max_tile_rows = max(sub, (_TARGET_TILE_BYTES // (cols * itemsize)) // sub * sub)
    n_tc = _num_tensorcores()

    if rows <= max_tile_rows and (n_tc == 1 or rows <= sub):
        # Fits in one tile; never force a split on single-TC parts (v5e/v6e) --
        # it would only add per-step overhead.  Full-dim block, so a row count
        # that is not a multiple of `sub` is still legal.
        row_tile = rows
    else:
        # Multi-step grid: round the step count up to a multiple of the
        # TensorCore count so the "parallel" axis shards evenly (v7x megacore).
        steps = max(pl.cdiv(rows, max_tile_rows), n_tc)
        steps = pl.cdiv(steps, n_tc) * n_tc
        row_tile = pl.cdiv(pl.cdiv(rows, steps), sub) * sub
        row_tile = max(sub, min(row_tile, max_tile_rows))
    grid = (pl.cdiv(rows, row_tile),)          # last block may be partial (masked)

    cost = pl.CostEstimate(
        flops=10 * rows * cols,
        transcendentals=rows * cols,           # one exp per element
        bytes_accessed=2 * rows * cols * itemsize,
    )

    # TODO(synk): if a v7x bundle dump shows the EUP slot binding, a bf16 exp
    # path (or pl.Buffered(3) input pipelining) could be added behind a flag.
    return pl.pallas_call(
        _mish_kernel,
        out_shape=jax.ShapeDtypeStruct((rows, cols), x2d.dtype),
        grid_spec=pltpu.PrefetchScalarGridSpec(
            num_scalar_prefetch=0,
            grid=grid,
            in_specs=[pl.BlockSpec((row_tile, cols), lambda i: (i, 0))],
            out_specs=pl.BlockSpec((row_tile, cols), lambda i: (i, 0)),
        ),
        compiler_params=pltpu.CompilerParams(
            dimension_semantics=("parallel",),
            vmem_limit_bytes=_VMEM_LIMIT_BYTES,
        ),
        cost_estimate=cost,
    )(x2d)


def mish(x: jax.Array, *, min_pallas_bytes: int = _MIN_PALLAS_BYTES) -> jax.Array:
    """Mish activation, elementwise, any shape.  Hot path in Pallas."""
    n = x.size
    if n == 0:
        return x
    if not jnp.issubdtype(x.dtype, jnp.floating):
        raise TypeError(f"mish expects a floating dtype, got {x.dtype}")
    itemsize = jnp.dtype(x.dtype).itemsize

    # Tiny tensors: kernel dispatch + pipeline prologue dominate; let XLA fuse.
    if n * itemsize < min_pallas_bytes:
        return _mish_ref(x)

    flat = x.reshape(-1)
    # Lane-dense 2-D factorization with no pad/copy when the size allows.
    cols = next((c for c in _LANE_CHOICES if n % c == 0), None)
    if cols is not None:
        return _mish_pallas_2d(flat.reshape(n // cols, cols)).reshape(x.shape)

    # Ragged element count: Pallas on the 128-aligned bulk, plain jnp on the
    # short (< cols) tail -- avoids a whole-array pad + slice round trip.
    cols = 1024 if n >= 1024 else 128
    n_bulk = (n // cols) * cols
    if n_bulk == 0:
        return _mish_ref(x)
    bulk = _mish_pallas_2d(flat[:n_bulk].reshape(n_bulk // cols, cols))
    tail = _mish_ref(flat[n_bulk:])
    return jnp.concatenate([bulk.reshape(-1), tail]).reshape(x.shape)


if __name__ == "__main__":
    k1, k2, k3 = jax.random.split(jax.random.PRNGKey(0), 3)

    # Canonical NCHW input matching the PyTorch module: batch=2, channels=4, 16x16.
    x = jax.random.normal(k1, (2, 4, 16, 16), dtype=jnp.float32) * 3.0
    ref = _mish_ref(x)
    y_fast = mish(x)                        # small-input fast path (pure jnp)
    y_kern = mish(x, min_pallas_bytes=0)    # force the Pallas kernel on the same data
    jax.block_until_ready((y_fast, y_kern))
    assert y_kern.shape == x.shape and y_kern.dtype == x.dtype
    assert jnp.allclose(y_fast, ref, atol=1e-5, rtol=1e-4)
    assert jnp.allclose(y_kern, ref, atol=1e-5, rtol=1e-4)

    # Larger input: multi-row tiles, multi-step grid.
    xb = jax.random.normal(k2, (8, 16, 128, 128), dtype=jnp.float32) * 3.0
    yb = mish(xb)
    jax.block_until_ready(yb)
    assert jnp.allclose(yb, _mish_ref(xb), atol=1e-5, rtol=1e-4)

    # Ragged element count: Pallas on the 128-aligned bulk + jnp tail.
    xr = jax.random.normal(k3, (3, 5, 7, 11), dtype=jnp.float32) * 3.0
    yr = mish(xr, min_pallas_bytes=0)
    jax.block_until_ready(yr)
    assert yr.shape == xr.shape
    assert jnp.allclose(yr, _mish_ref(xr), atol=1e-5, rtol=1e-4)

    print("KERNEL_OK")
</pallas_src>

<mosaic_0001>
module attributes {stable_mosaic.version = 11 : i64} {
  func.func @_mish_kernel(%arg0: i32, %arg1: memref<1x2048xf32, #tpu.memory_space<vmem>>, %arg2: memref<1x2048xf32, #tpu.memory_space<vmem>>) attributes {dimension_semantics = [#tpu.dimension_semantics<parallel>], iteration_bounds = array<i64: 1>, scalar_prefetch = 0 : i64, scratch_operands = 0 : i64, tpu.core_type = #tpu.core_type<tc>, window_params = [{transform_indices = @transform_0, window_bounds = array<i64: 1, 2048>}, {transform_indices = @transform_1, window_bounds = array<i64: 1, 2048>}]} {
    %c0 = arith.constant 0 : index
    %c0_0 = arith.constant 0 : index
    %0 = vector.load %arg1[%c0, %c0_0] : memref<1x2048xf32, #tpu.memory_space<vmem>>, vector<1x2048xf32>
    %cst = arith.constant 2.000000e+01 : f32
    %1 = vector.broadcast %cst : f32 to vector<1x2048xf32>
    %2 = arith.minimumf %0, %1 : vector<1x2048xf32>
    %3 = math.exp %2 : vector<1x2048xf32>
    %cst_1 = arith.constant 2.000000e+00 : f32
    %4 = vector.broadcast %cst_1 : f32 to vector<1x2048xf32>
    %5 = arith.addf %3, %4 : vector<1x2048xf32>
    %6 = arith.mulf %3, %5 : vector<1x2048xf32>
    %cst_2 = arith.constant 2.000000e+01 : f32
    %7 = vector.broadcast %cst_2 : f32 to vector<1x2048xf32>
    %8 = arith.cmpf ogt, %0, %7 : vector<1x2048xf32>
    %cst_3 = arith.constant 2.000000e+00 : f32
    %9 = vector.broadcast %cst_3 : f32 to vector<1x2048xf32>
    %10 = arith.addf %6, %9 : vector<1x2048xf32>
    %11 = arith.divf %6, %10 : vector<1x2048xf32>
    %12 = arith.mulf %0, %11 : vector<1x2048xf32>
    %13 = arith.select %8, %0, %12 : vector<1x2048xi1>, vector<1x2048xf32>
    %c0_4 = arith.constant 0 : index
    %c0_5 = arith.constant 0 : index
    %14 = vector.load %arg2[%c0_4, %c0_5] : memref<1x2048xf32, #tpu.memory_space<vmem>>, vector<1x2048xf32>
    tpu.vector_store %arg2[%c0_4, %c0_5], %13 {strides = array<i32>} : memref<1x2048xf32, #tpu.memory_space<vmem>>, vector<1x2048xf32>,
    return
  }
  func.func @transform_0(%arg0: i32) -> (i32, i32) {
    %c0_i32 = arith.constant 0 : i32
    %c0_i32_0 = arith.constant 0 : i32
    return %arg0, %c0_i32 : i32, i32
  }
  func.func @transform_1(%arg0: i32) -> (i32, i32) {
    %c0_i32 = arith.constant 0 : i32
    %c0_i32_0 = arith.constant 0 : i32
    return %arg0, %c0_i32 : i32, i32
  }
}

</mosaic_0001>

<bundles_post_ra>
// kernel: tpu_custom_call.1
= control target key start
LH: loop header
LB: loop body
LE: loop exit
PB: predicated region body
PF: predicated region fallthrough
CT: control target
= control target key end

     0   :  { %6 = vsyncpa [#allocation3], 0  ;;  %s134_s0 = inlined_call_operand.hbm [shape: f32[1,2048], index: 0, kind: input, shape index: {}]   ;;  %s135_s1 = inlined_call_operand.hbm [shape: f32[1,2048], index: 1, kind: output, shape index: {}]  }
   0x1   :  { %7 = vsyncpa [#allocation4], 0  ;;  %s116_s6 = smov [#allocation2]  }
   0x2   :  { %s14_s7 = sshll.u32 %s116_s6, 4  ;;  %s15_s7 = int_to_ptr.vmem [resolvable:$true] %s14_s7 }
   0x3   :  { %s80_s8 = scalar_lea.vmem %s15_s7, 256  ;;  %p85_p1 = scmp.lt.s32.totalorder %s15_s7, %s15_s7 }
   0x4   :  { %p81_p0 = scmp.ne.s32.totalorder %s15_s7, %s80_s8  ;;  %p86_p2 = scmp.lt.s32.totalorder %s80_s8, %s80_s8 }
   0x6   :  { %p87_p3 = por %p86_p2, %p85_p1 }
   0x8   :  { %p88_p4 = pnand %p87_p3, %p81_p0 }
   0xa   :  { %91 = shalt.err (!%p88_p4)
}
   0xb   :  { %17 = dma.hbm_to_vmem [thread:$0]  %s134_s0, 256, %s15_s7, [#allocation3]  }
   0xc   :  { %112 = dma.done.wait [#allocation3], 256  }
   0xd   :  { %113 = vsyncadd [#allocation3], 4294967040  ;;  %v21_v0 = vld [vmem:[#allocation2] sm:$0xff]  ;;  %v22_v1 = vld [vmem:[#allocation2 + $0x8] sm:$0xff]  ;;  %s117_s0 = smov [#allocation5]  }
   0xe   :  { %v23_v2 = vmin.f32 %v21_v0, 20.0  ;;  %v24_v3 = vmin.f32 %v22_v1, 20.0  ;;  %vm33_vm0 = vcmp.gt.f32.partialorder %v21_v0, 20.0  ;;  %s53_s11 = sshll.u32 %s117_s0, 4  ;;  %vm34_vm1 = vcmp.gt.f32.partialorder %v22_v1, 20.0  ;;  %s54_s11 = int_to_ptr.vmem [resolvable:$true] %s53_s11 }
   0xf   :  { %s92_s12 = scalar_lea.vmem %s54_s11, 256  ;;  %p97_p6 = scmp.lt.s32.totalorder %s54_s11, %s54_s11 }
  0x10   :  { %v25_v4 = vmul.f32 1.442695, %v23_v2  ;;  %v27_v5 = vmul.f32 1.442695, %v24_v3  ;;  %p93_p5 = scmp.ne.s32.totalorder %s54_s11, %s92_s12  ;;  %p98_p7 = scmp.lt.s32.totalorder %s92_s12, %s92_s12 }
  0x12   :  { %64 = vpow2.f32 %v25_v4  ;;  %p99_p8 = por %p98_p7, %p97_p6 }
  0x13   :  { %66 = vpow2.f32 %v27_v5 }
  0x14   :  { %p100_p9 = pnand %p99_p8, %p93_p5 }
  0x1f   :  { %v65_v6 = vpop.eup %64 }
  0x20   :  { %v67_v7 = vpop.eup %66  ;;  %v29_v8 = vadd.f32 2.0, %v65_v6 }
  0x21   :  { %v30_v9 = vadd.f32 2.0, %v67_v7 }
  0x22   :  { %v31_v10 = vmul.f32 %v65_v6, %v29_v8 }
  0x23   :  { %v32_v11 = vmul.f32 %v67_v7, %v30_v9 }
  0x24   :  { %v35_v12 = vadd.f32 2.0, %v31_v10 }
  0x25   :  { %v36_v13 = vadd.f32 2.0, %v32_v11 }
  0x26   :  { %68 = vrcp.f32 %v35_v12 }
  0x27   :  { %70 = vrcp.f32 %v36_v13 }
  0x33   :  { %v69_v14 = vpop.eup %68 }
  0x34   :  { %v71_v15 = vpop.eup %70  ;;  %v38_v16 = vmul.f32 %v69_v14, %v31_v10 }
  0x35   :  { %v40_v17 = vmul.f32 %v71_v15, %v32_v11 }
  0x36   :  { %v41_v18 = vmul.f32 %v38_v16, %v21_v0 }
  0x37   :  { %v42_v19 = vmul.f32 %v40_v17, %v22_v1 }
  0x38   :  { %v43_v20 = vsel %vm33_vm0, %v21_v0, %v41_v18 }
  0x39   :  { %45 = vst [vmem:[#allocation5] sm:$0xff] %v43_v20  ;;  %v44_v21 = vsel %vm34_vm1, %v22_v1, %v42_v19 }
  0x3a   :  { %46 = vst [vmem:[#allocation5 + $0x8] sm:$0xff] %v44_v21 }
  0x3b   :  { %103 = shalt.err (!%p100_p9)
}
  0x3c   :  { %56 = dma.vmem_to_hbm [thread:$0]  %s54_s11, 256, %s135_s1, [#allocation4]  }
  0x3d   :  { %114 = dma.done.wait [#allocation4], 256  }
  0x3e   :  { %115 = vsyncadd [#allocation4], 4294967040 }
  0x3f   :  { %60 = vsyncpa [#allocation3], 1 }
  0x40   :  { %61 = vsyncpa [#allocation4], 1 }

</bundles_post_ra>
